<compile_context>
chip_gen: v5e
topology: v5e:2x2
jax: 0.10.0
libtpu: 0.0.40
codegen_flags: <defaults>
</compile_context>

<pallas_src>
import functools
import math

import jax
import jax.numpy as jnp
from jax import lax
from jax.experimental import pallas as pl
from jax.experimental.pallas import tpu as pltpu


# ---------------------------------------------------------------------------
# Kernel 1: O(B*D) pre-pass -> inv_emb_norm, final_target, cos_theta_m, new_t
# ---------------------------------------------------------------------------
def _prepass_kernel(emb_ref, w_lab_ref, t_ref,
                    inv_norm_ref, final_ref, ctm_ref, new_t_ref,
                    *, cos_m, sin_m, threshold, mm):
    emb = emb_ref[...].astype(jnp.float32)           # (B, D)
    wl = w_lab_ref[...].astype(jnp.float32)          # (B, D) gathered label cols

    inv_e = lax.rsqrt(jnp.sum(emb * emb, axis=1, keepdims=True))   # (B, 1)
    inv_w = lax.rsqrt(jnp.sum(wl * wl, axis=1, keepdims=True))     # (B, 1)

    # target_logit = <emb_n, w_n[:, label]>  (normalization applied post-dot)
    tl = jnp.sum(emb * wl, axis=1, keepdims=True) * inv_e * inv_w
    tl = jnp.clip(tl, -1.0, 1.0)

    sin_theta = jnp.sqrt(1.0 - tl * tl)
    ctm = tl * cos_m - sin_theta * sin_m
    final = jnp.where(tl > threshold, ctm, tl - mm)

    new_t_ref[0, 0] = jnp.mean(tl) * 0.01 + 0.99 * t_ref[0, 0]
    inv_norm_ref[...] = inv_e
    final_ref[...] = final
    ctm_ref[...] = ctm


# ---------------------------------------------------------------------------
# Kernel 2: streaming matmul over C tiles + fused margin epilogue + online LSE
# ---------------------------------------------------------------------------
def _stream_kernel(label_ref, emb_ref, inv_norm_ref, final_ref, ctm_ref, t_ref,
                   w_ref, out_ref, rowloss_ref, m_sc, l_sc, *, s, tc):
    j = pl.program_id(1)

    @pl.when(j == 0)
    def _():
        m_sc[...] = jnp.full_like(m_sc, -jnp.inf)
        l_sc[...] = jnp.zeros_like(l_sc)

    # Weight tile streamed in its HBM dtype (e.g. bf16), cast in-kernel,
    # accumulate in f32 on the MXU.
    w = w_ref[...].astype(jnp.float32)                               # (D, tc)
    inv_col = lax.rsqrt(jnp.sum(w * w, axis=0, keepdims=True))       # (1, tc)

    raw = jnp.dot(emb_ref[...].astype(jnp.float32), w,
                  preferred_element_type=jnp.float32)                # (tb, tc)
    # Post-matmul normalization (saves a full (D,tC) elementwise pass).
    cos = jnp.clip(raw * inv_norm_ref[...] * inv_col, -1.0, 1.0)

    labels = label_ref[...]                                          # (tb, 1)
    col = j * tc + lax.broadcasted_iota(jnp.int32, cos.shape, 1)
    onehot = col == labels

    new_t = t_ref[0, 0]
    ctm = ctm_ref[...]                                               # (tb, 1)
    final = final_ref[...]                                           # (tb, 1)

    # Fused epilogue: hard-example reweighting + one-hot scatter + scale.
    hard = cos * (new_t + cos)
    cos = jnp.where(cos > ctm, hard, cos)
    cos = jnp.where(onehot, final, cos)
    logits = cos * s
    out_ref[...] = logits.astype(out_ref.dtype)

    # Online logsumexp across C tiles.
    tile_max = jnp.max(logits, axis=1, keepdims=True)
    m_new = jnp.maximum(m_sc[...], tile_max)
    l_sc[...] = l_sc[...] * jnp.exp(m_sc[...] - m_new) + jnp.sum(
        jnp.exp(logits - m_new), axis=1, keepdims=True)
    m_sc[...] = m_new

    @pl.when(j == pl.num_programs(1) - 1)
    def _():
        # target logit of the loss is exactly final_target * s (already
        # scattered into the logits) -> no second one-hot reduction.
        rowloss_ref[...] = m_sc[...] + jnp.log(l_sc[...]) - final * s


def _pick_tile(n, candidates):
    for c in candidates:
        if n % c == 0:
            return c
    return n


def curricular_face_forward(embeddings, label, weight, t, *, m=0.5, s=64.0,
                            tile_b=None, tile_c=None, logits_dtype=None):
    """Returns (loss, scaled_logits, new_t). `weight` may be bf16 (streamed)."""
    B, D = embeddings.shape
    D2, C = weight.shape
    assert D == D2
    logits_dtype = logits_dtype or jnp.float32

    emb = embeddings.astype(jnp.float32)
    label = label.astype(jnp.int32)
    t2d = jnp.asarray(t, jnp.float32).reshape(1, 1)

    cos_m, sin_m = math.cos(m), math.sin(m)
    threshold = math.cos(math.pi - m)
    mm = math.sin(math.pi - m) * m

    # Gather the B label columns of the weight once (O(B*D)).
    # TODO(synk): dynamic column gather stays in XLA; a Pallas version needs a
    # per-row strided DMA gather loop over HBM which is not worth it here.
    w_lab = jnp.take(weight, label, axis=1).T                        # (B, D)

    inv_norm, final_t, ctm, new_t = pl.pallas_call(
        functools.partial(_prepass_kernel, cos_m=cos_m, sin_m=sin_m,
                          threshold=threshold, mm=mm),
        out_shape=(
            jax.ShapeDtypeStruct((B, 1), jnp.float32),   # 1/||emb||
            jax.ShapeDtypeStruct((B, 1), jnp.float32),   # final target logit
            jax.ShapeDtypeStruct((B, 1), jnp.float32),   # cos(theta + m)
            jax.ShapeDtypeStruct((1, 1), jnp.float32),   # updated t
        ),
        in_specs=[
            pl.BlockSpec(memory_space=pltpu.MemorySpace.VMEM),   # emb
            pl.BlockSpec(memory_space=pltpu.MemorySpace.VMEM),   # w_lab
            pl.BlockSpec(memory_space=pltpu.MemorySpace.SMEM),   # t (1,1)
        ],
        out_specs=(
            pl.BlockSpec(memory_space=pltpu.MemorySpace.VMEM),
            pl.BlockSpec(memory_space=pltpu.MemorySpace.VMEM),
            pl.BlockSpec(memory_space=pltpu.MemorySpace.VMEM),
            pl.BlockSpec(memory_space=pltpu.MemorySpace.SMEM),
        ),
    )(emb, w_lab, t2d)

    # --- tiling --------------------------------------------------------------
    tb = tile_b if tile_b is not None else _pick_tile(B, (256, 128, 64, 32, 16, 8))
    tc = tile_c if tile_c is not None else _pick_tile(C, (1024, 512, 256, 128))
    if B % tb or C % tc:
        raise ValueError(f"B={B} must divide tile_b={tb} and C={C} tile_c={tc}")

    # Explicit VMEM budget (double-buffered weight + logits + resident inputs),
    # with headroom, capped so it fits v7x's 64 MiB as well as v5e/v6e.
    est = 2 * (D * tc * jnp.dtype(weight.dtype).itemsize
               + tb * tc * jnp.dtype(logits_dtype).itemsize
               + tb * D * 4) + 8 * tb * 4
    vmem_limit = int(min(max(2 * est + (4 << 20), 16 << 20), 48 << 20))

    grid = (B // tb, C // tc)
    label2d = label.reshape(B, 1)

    logits, rowloss = pl.pallas_call(
        functools.partial(_stream_kernel, s=s, tc=tc),
        out_shape=(
            jax.ShapeDtypeStruct((B, C), logits_dtype),   # scaled logits
            jax.ShapeDtypeStruct((B, 1), jnp.float32),    # per-row CE loss
        ),
        grid_spec=pltpu.PrefetchScalarGridSpec(
            num_scalar_prefetch=0,
            grid=grid,
            in_specs=[
                pl.BlockSpec((tb, 1), lambda i, j: (i, 0)),    # labels
                pl.BlockSpec((tb, D), lambda i, j: (i, 0)),    # embeddings
                pl.BlockSpec((tb, 1), lambda i, j: (i, 0)),    # 1/||emb||
                pl.BlockSpec((tb, 1), lambda i, j: (i, 0)),    # final target
                pl.BlockSpec((tb, 1), lambda i, j: (i, 0)),    # cos(theta+m)
                pl.BlockSpec((1, 1), lambda i, j: (0, 0),
                             memory_space=pltpu.MemorySpace.SMEM),  # new_t
                pl.BlockSpec((D, tc), lambda i, j: (0, j)),    # weight (bf16)
            ],
            out_specs=(
                pl.BlockSpec((tb, tc), lambda i, j: (i, j)),   # logits
                pl.BlockSpec((tb, 1), lambda i, j: (i, 0)),    # row loss
            ),
            scratch_shapes=[
                pltpu.VMEM((tb, 1), jnp.float32),   # running max
                pltpu.VMEM((tb, 1), jnp.float32),   # running sum
            ],
        ),
        compiler_params=pltpu.CompilerParams(
            dimension_semantics=("parallel", "arbitrary"),
            vmem_limit_bytes=vmem_limit),
    )(label2d, emb, inv_norm, final_t, ctm, new_t, weight)

    # TODO(synk): SoftmaxLossMixin._calc_loss source unavailable; assumed
    # standard mean softmax cross-entropy over the scaled logits.
    loss = jnp.mean(rowloss)
    return loss, logits, new_t.reshape(())


# ---------------------------------------------------------------------------
# Pure-JAX reference mirroring the PyTorch module (for verification).
# ---------------------------------------------------------------------------
def _reference_forward(emb, label, w, t, *, m=0.5, s=64.0):
    cos_m, sin_m = math.cos(m), math.sin(m)
    threshold = math.cos(math.pi - m)
    mm = math.sin(math.pi - m) * m
    emb_n = emb / jnp.linalg.norm(emb, axis=1, keepdims=True)
    w_n = w / jnp.linalg.norm(w, axis=0, keepdims=True)
    cos = jnp.clip(emb_n @ w_n, -1.0, 1.0)
    B, C = cos.shape
    tl = cos[jnp.arange(B), label][:, None]
    sin_theta = jnp.sqrt(1.0 - tl * tl)
    ctm = tl * cos_m - sin_theta * sin_m
    mask = cos > ctm
    ftl = jnp.where(tl > threshold, ctm, tl - mm)
    new_t = tl.mean() * 0.01 + 0.99 * t
    cos = jnp.where(mask, cos * (new_t + cos), cos)
    onehot = jax.nn.one_hot(label, C, dtype=bool)
    cos = jnp.where(onehot, jnp.broadcast_to(ftl, (B, C)), cos)
    logits = cos * s
    loss = jnp.mean(jax.nn.logsumexp(logits, axis=1)
                    - jnp.take_along_axis(logits, label[:, None], axis=1)[:, 0])
    return loss, logits, new_t


if __name__ == "__main__":
    B, in_features, out_features = 16, 256, 1024
    key = jax.random.PRNGKey(0)
    k_emb, k_w, k_lbl = jax.random.split(key, 3)

    embeddings = jax.random.normal(k_emb, (B, in_features), dtype=jnp.float32)
    # torch.nn.init.normal_(self.kernel, std=0.01); stored/streamed as bf16.
    weight = (0.01 * jax.random.normal(k_w, (in_features, out_features),
                                       dtype=jnp.float32)).astype(jnp.bfloat16)
    label = jax.random.randint(k_lbl, (B,), 0, out_features, dtype=jnp.int32)
    t0 = jnp.zeros((), jnp.float32)   # registered buffer 't'

    loss, logits, new_t = curricular_face_forward(
        embeddings, label, weight, t0, tile_b=8, tile_c=256)
    jax.block_until_ready((loss, logits, new_t))

    loss_ref, logits_ref, t_ref = _reference_forward(
        embeddings, label, weight.astype(jnp.float32), t0)

    assert jnp.allclose(logits, logits_ref, rtol=2e-4, atol=2e-3), "logits mismatch"
    assert jnp.allclose(loss, loss_ref, rtol=2e-4, atol=1e-2), "loss mismatch"
    assert jnp.allclose(new_t, t_ref, rtol=1e-5, atol=1e-6), "t buffer mismatch"

    print("KERNEL_OK")
</pallas_src>

<mosaic_0001>
module attributes {stable_mosaic.version = 11 : i64} {
  func.func @_prepass_kernel(%arg0: memref<16x256xf32, #tpu.memory_space<vmem>>, %arg1: memref<16x256xbf16, #tpu.memory_space<vmem>>, %arg2: memref<1x1xf32, #tpu.memory_space<smem>>, %arg3: memref<16x1xf32, #tpu.memory_space<vmem>>, %arg4: memref<16x1xf32, #tpu.memory_space<vmem>>, %arg5: memref<16x1xf32, #tpu.memory_space<vmem>>, %arg6: memref<1x1xf32, #tpu.memory_space<smem>>) attributes {dimension_semantics = [], scalar_prefetch = 0 : i64, scratch_operands = 0 : i64, tpu.core_type = #tpu.core_type<tc>} {
    %c0 = arith.constant 0 : index
    %c0_0 = arith.constant 0 : index
    %0 = vector.load %arg0[%c0, %c0_0] : memref<16x256xf32, #tpu.memory_space<vmem>>, vector<16x256xf32>
    %c0_1 = arith.constant 0 : index
    %c0_2 = arith.constant 0 : index
    %1 = vector.load %arg1[%c0_1, %c0_2] : memref<16x256xbf16, #tpu.memory_space<vmem>>, vector<16x256xbf16>
    %2 = arith.extf %1 : vector<16x256xbf16> to vector<16x256xf32>
    %3 = arith.mulf %0, %0 : vector<16x256xf32>
    %cst = arith.constant dense<0.000000e+00> : vector<16xf32>
    %4 = vector.multi_reduction <add>, %3, %cst [1] : vector<16x256xf32> to vector<16xf32>
    %5 = vector.shape_cast %4 : vector<16xf32> to vector<16x1xf32>
    %6 = math.rsqrt %5 : vector<16x1xf32>
    %7 = arith.mulf %2, %2 : vector<16x256xf32>
    %cst_3 = arith.constant dense<0.000000e+00> : vector<16xf32>
    %8 = vector.multi_reduction <add>, %7, %cst_3 [1] : vector<16x256xf32> to vector<16xf32>
    %9 = vector.shape_cast %8 : vector<16xf32> to vector<16x1xf32>
    %10 = math.rsqrt %9 : vector<16x1xf32>
    %11 = arith.mulf %0, %2 : vector<16x256xf32>
    %cst_4 = arith.constant dense<0.000000e+00> : vector<16xf32>
    %12 = vector.multi_reduction <add>, %11, %cst_4 [1] : vector<16x256xf32> to vector<16xf32>
    %13 = vector.shape_cast %12 : vector<16xf32> to vector<16x1xf32>
    %14 = arith.mulf %13, %6 : vector<16x1xf32>
    %15 = arith.mulf %14, %10 : vector<16x1xf32>
    %cst_5 = arith.constant -1.000000e+00 : f32
    %cst_6 = arith.constant 1.000000e+00 : f32
    %16 = vector.broadcast %cst_5 : f32 to vector<16x1xf32>
    %17 = arith.maximumf %16, %15 : vector<16x1xf32>
    %18 = vector.broadcast %cst_6 : f32 to vector<16x1xf32>
    %19 = arith.minimumf %18, %17 : vector<16x1xf32>
    %20 = arith.mulf %19, %19 : vector<16x1xf32>
    %cst_7 = arith.constant 1.000000e+00 : f32
    %21 = vector.broadcast %cst_7 : f32 to vector<16x1xf32>
    %22 = arith.subf %21, %20 : vector<16x1xf32>
    %23 = math.sqrt %22 : vector<16x1xf32>
    %cst_8 = arith.constant 0.87758255 : f32
    %24 = vector.broadcast %cst_8 : f32 to vector<16x1xf32>
    %25 = arith.mulf %19, %24 : vector<16x1xf32>
    %cst_9 = arith.constant 0.47942555 : f32
    %26 = vector.broadcast %cst_9 : f32 to vector<16x1xf32>
    %27 = arith.mulf %23, %26 : vector<16x1xf32>
    %28 = arith.subf %25, %27 : vector<16x1xf32>
    %cst_10 = arith.constant -0.87758255 : f32
    %29 = vector.broadcast %cst_10 : f32 to vector<16x1xf32>
    %30 = arith.cmpf ogt, %19, %29 : vector<16x1xf32>
    %cst_11 = arith.constant 0.239712775 : f32
    %31 = vector.broadcast %cst_11 : f32 to vector<16x1xf32>
    %32 = arith.subf %19, %31 : vector<16x1xf32>
    %33 = arith.select %30, %28, %32 : vector<16x1xi1>, vector<16x1xf32>
    %34 = vector.shape_cast %19 : vector<16x1xf32> to vector<1x16x1xf32>
    %cst_12 = arith.constant dense<0.000000e+00> : vector<1xf32>
    %35 = vector.multi_reduction <add>, %34, %cst_12 [1, 2] : vector<1x16x1xf32> to vector<1xf32>
    %36 = vector.shape_cast %35 : vector<1xf32> to vector<1x1x1xf32>
    %37 = vector.extract %36[0, 0, 0] : f32 from vector<1x1x1xf32>
    %cst_13 = arith.constant 1.600000e+01 : f32
    %38 = arith.divf %37, %cst_13 : f32
    %cst_14 = arith.constant 0.00999999977 : f32
    %39 = arith.mulf %38, %cst_14 : f32
    %c0_15 = arith.constant 0 : index
    %c0_16 = arith.constant 0 : index
    %40 = memref.load %arg2[%c0_15, %c0_16] : memref<1x1xf32, #tpu.memory_space<smem>>
    %cst_17 = arith.constant 9.900000e-01 : f32
    %41 = arith.mulf %cst_17, %40 : f32
    %42 = arith.addf %39, %41 : f32
    %c0_18 = arith.constant 0 : index
    %c0_19 = arith.constant 0 : index
    %43 = memref.load %arg6[%c0_18, %c0_19] : memref<1x1xf32, #tpu.memory_space<smem>>
    memref.store %42, %arg6[%c0_18, %c0_19] : memref<1x1xf32, #tpu.memory_space<smem>>
    %c0_20 = arith.constant 0 : index
    %c0_21 = arith.constant 0 : index
    %44 = vector.load %arg3[%c0_20, %c0_21] : memref<16x1xf32, #tpu.memory_space<vmem>>, vector<16x1xf32>
    tpu.vector_store %arg3[%c0_20, %c0_21], %6 {strides = array<i32>} : memref<16x1xf32, #tpu.memory_space<vmem>>, vector<16x1xf32>,
    %c0_22 = arith.constant 0 : index
    %c0_23 = arith.constant 0 : index
    %45 = vector.load %arg4[%c0_22, %c0_23] : memref<16x1xf32, #tpu.memory_space<vmem>>, vector<16x1xf32>
    tpu.vector_store %arg4[%c0_22, %c0_23], %33 {strides = array<i32>} : memref<16x1xf32, #tpu.memory_space<vmem>>, vector<16x1xf32>,
    %c0_24 = arith.constant 0 : index
    %c0_25 = arith.constant 0 : index
    %46 = vector.load %arg5[%c0_24, %c0_25] : memref<16x1xf32, #tpu.memory_space<vmem>>, vector<16x1xf32>
    tpu.vector_store %arg5[%c0_24, %c0_25], %28 {strides = array<i32>} : memref<16x1xf32, #tpu.memory_space<vmem>>, vector<16x1xf32>,
    return
  }
}

</mosaic_0001>

<bundles_post_ra>
// kernel: tpu_custom_call.1
= control target key start
LH: loop header
LB: loop body
LE: loop exit
PB: predicated region body
PF: predicated region fallthrough
CT: control target
= control target key end

     0   :  { %13 = vsyncpa [#allocation4], 0  ;;  %s420_s0 = inlined_call_operand.hbm [shape: f32[16,256], index: 0, kind: input, shape index: {}]   ;;  %s421_s1 = inlined_call_operand.hbm [shape: bf16[16,256], index: 1, kind: input, shape index: {}]   ;;  %s422_s2 = inlined_call_operand.<no memory space> [shape: f32[1,1], index: 2, kind: input, shape index: {}]   ;;  %s423_s3 = inlined_call_operand.vmem [shape: f32[16,1], index: 3, kind: output, shape index: {0}]   ;;  %s424_s4 = inlined_call_operand.vmem [shape: f32[16,1], index: 4, kind: output, shape index: {1}]   ;;  %s425_s5 = inlined_call_operand.vmem [shape: f32[16,1], index: 5, kind: output, shape index: {2}]   ;;  %s426_s6 = inlined_call_operand.hbm [shape: f32[1,1], index: 6, kind: output, shape index: {3}]  }
   0x1   :  { %14 = vsyncpa [#allocation7], 0 }
   0x2   :  { %15 = vsyncpa [#allocation5], 0  ;;  %s20_s23 = sshll.u32 %s420_s0, 4  ;;  %s339_s24 = smov [#allocation3]   ;;  %s21_s23 = int_to_ptr.hbm [resolvable:$true] %s20_s23 }
   0x3   :  { %s22_s25 = sshll.u32 %s339_s24, 4  ;;  %s33_s28 = sshll.u32 %s421_s1, 4  ;;  %s23_s25 = int_to_ptr.vmem [resolvable:$true] %s22_s25  ;;  %s34_s28 = int_to_ptr.hbm [resolvable:$true] %s33_s28 }
   0x4   :  { %s340_s29 = smov 256   ;;  %s341_s30 = smov 16  }
   0x5   :  { %28 = dma.hbm_to_vmem [thread:$0]  %s21_s23, 512, %s23_s25, [#allocation4], %s340_s29, %s340_s29, %s341_s30  }
   0x6   :  { %s342_s7 = smov [#allocation6]   ;;  %s343_s9 = smov 128  }
   0x7   :  { %s35_s8 = sshll.u32 %s342_s7, 4  ;;  %s344_s10 = smov 8   ;;  %s36_s8 = int_to_ptr.vmem [resolvable:$true] %s35_s8 }
   0x8   :  { %41 = dma.hbm_to_vmem [thread:$0]  %s34_s28, 256, %s36_s8, [#allocation7], %s343_s9, %s343_s9, %s344_s10  }
   0x9   :  { %333 = dma.done.wait [#allocation4], 512  }
   0xa   :  { %334 = vsyncadd [#allocation4], 4294966784 }
   0xb   :  { %335 = dma.done.wait [#allocation7], 256  }
   0xc   :  { %336 = vsyncadd [#allocation7], 4294967040  ;;  %v52_v0 = vld [vmem:[#allocation3] sm:$0xff]  ;;  %v53_v1 = vld [vmem:[#allocation3 + $0x8] sm:$0xff]  ;;  %vm180_vm3 = vcmask 7168   ;;  %s225_s26 = sshll.u32 %s426_s6, 4  ;;  %s226_s26 = int_to_ptr.hbm [resolvable:$true] %s225_s26 }
   0xd   :  { %v56_v2 = vld [vmem:[#allocation6] sm:$0xff]  ;;  %v62_v3 = vmul.f32 %v52_v0, %v52_v0  ;;  %v63_v4 = vmul.f32 %v53_v1, %v53_v1  ;;  %v57_v7 = vld [vmem:[#allocation6 + $0x8] sm:$0xff]  ;;  %v54_v8 = vld [vmem:[#allocation3 + $0x10] sm:$0xff]  ;;  %s204_s22 = smul.f32 0.99, %s422_s2  ;;  %s346_s29 = smov [#allocation8]  }
   0xe   :  { %v58_v5 = vunpack.c.l.bf16 %v56_v2  ;;  %v59_v6 = vunpack.c.h.bf16 %v56_v2  ;;  %v55_v9 = vld [vmem:[#allocation3 + $0x18] sm:$0xff]  ;;  %v60_v10 = vunpack.c.l.bf16 %v57_v7  ;;  %v61_v11 = vunpack.c.h.bf16 %v57_v7 }
   0xf   :  { %v66_v12 = vadd.f32 %v63_v4, %v62_v3  ;;  %v64_v18 = vmul.f32 %v54_v8, %v54_v8  ;;  %v65_v19 = vmul.f32 %v55_v9, %v55_v9 }
  0x10   :  { %v92_v13 = vmul.f32 %v58_v5, %v58_v5  ;;  %v93_v14 = vmul.f32 %v59_v6, %v59_v6  ;;  %v122_v15 = vmul.f32 %v58_v5, %v52_v0  ;;  %v123_v16 = vmul.f32 %v59_v6, %v53_v1 }
  0x11   :  { %67 = vadd.xlane.f32.xlu0 %v66_v12  ;;  %v94_v21 = vmul.f32 %v60_v10, %v60_v10  ;;  %v95_v22 = vmul.f32 %v61_v11, %v61_v11  ;;  %v124_v23 = vmul.f32 %v60_v10, %v54_v8  ;;  %v125_v24 = vmul.f32 %v61_v11, %v55_v9 }
  0x12   :  { %v96_v17 = vadd.f32 %v93_v14, %v92_v13  ;;  %v126_v20 = vadd.f32 %v123_v16, %v122_v15  ;;  %v69_v25 = vadd.f32 %v65_v19, %v64_v18 }
  0x13   :  { %v99_v26 = vadd.f32 %v95_v22, %v94_v21  ;;  %v129_v27 = vadd.f32 %v125_v24, %v124_v23 }
  0x14   :  { %97 = vadd.xlane.f32.xlu1 %v96_v17  ;;  %127 = vadd.xlane.f32.xlu2 %v126_v20 }
  0x19   :  { %70 = vadd.xlane.f32.xlu0 %v69_v25 }
  0x1c   :  { %100 = vadd.xlane.f32.xlu1 %v99_v26  ;;  %130 = vadd.xlane.f32.xlu2 %v129_v27 }
  0x84   :  { %v68_v28 = vpop.xlane.xlu0 %67 }
  0x85   :  { %259 = vrsqrt.f32 %v68_v28  ;;  %vm78_vm2 = vweird.f32 %v68_v28 }
  0x87   :  { %v98_v29 = vpop.xlane.xlu1 %97  ;;  %v128_v42 = vpop.xlane.xlu2 %127 }
  0x88   :  { %261 = vrsqrt.f32 %v98_v29  ;;  %vm108_vm4 = vweird.f32 %v98_v29 }
  0x8b   :  { %v260_v30 = vpop.eup %259 }
  0x8c   :  { %v73_v31 = vmul.f32 %v260_v30, %v68_v28  ;;  %v71_v32 = vpop.xlane.xlu0 %70  ;;  %vm79_vm0 = vweird.f32 %v260_v30 }
  0x8d   :  { %263 = vrsqrt.f32 %v71_v32  ;;  %vm80_vm5 = vmor %vm78_vm2, %vm79_vm0  ;;  %vm88_vm9 = vweird.f32 %v71_v32 }
  0x8e   :  { %v262_v33 = vpop.eup %261  ;;  %v74_v34 = vmul.f32 %v260_v30, %v73_v31 }
  0x8f   :  { %v103_v35 = vmul.f32 %v262_v33, %v98_v29  ;;  %v101_v36 = vpop.xlane.xlu1 %100  ;;  %vm109_vm1 = vweird.f32 %v262_v33  ;;  %v131_v61 = vpop.xlane.xlu2 %130 }
  0x90   :  { %265 = vrsqrt.f32 %v101_v36  ;;  %v75_v37 = vmul.f32 0.5, %v74_v34  ;;  %vm110_vm6 = vmor %vm108_vm4, %vm109_vm1  ;;  %vm118_vm10 = vweird.f32 %v101_v36 }
  0x91   :  { %v104_v38 = vmul.f32 %v262_v33, %v103_v35 }
  0x92   :  { %v76_v39 = vsub.f32 1.5, %v75_v37 }
  0x93   :  { %v105_v40 = vmul.f32 0.5, %v104_v38  ;;  %v264_v41 = vpop.eup %263 }
  0x94   :  { %v83_v44 = vmul.f32 %v264_v41, %v71_v32  ;;  %v77_v45 = vmul.f32 %v260_v30, %v76_v39  ;;  %vm89_vm7 = vweird.f32 %v264_v41 }
  0x95   :  { %v106_v43 = vsub.f32 1.5, %v105_v40  ;;  %vm90_vm11 = vmor %vm88_vm9, %vm89_vm7 }
  0x96   :  { %v266_v46 = vpop.eup %265  ;;  %v84_v47 = vmul.f32 %v264_v41, %v83_v44  ;;  %v81_v50 = vsel %vm80_vm5, %v260_v30, %v77_v45 }
  0x97   :  { %v113_v48 = vmul.f32 %v266_v46, %v101_v36  ;;  %v107_v49 = vmul.f32 %v262_v33, %v106_v43  ;;  %v132_v54 = vmul.f32 %v128_v42, %v81_v50  ;;  %208 = vst.msk [vmem:[%s423_s3] sm:$0xff] %vm180_vm3, %v81_v50  ;;  %vm119_vm8 = vweird.f32 %v266_v46 }
  0x98   :  { %v85_v51 = vmul.f32 0.5, %v84_v47  ;;  %vm120_vm12 = vmor %vm118_vm10, %vm119_vm8 }
  0x99   :  { %v114_v52 = vmul.f32 %v266_v46, %v113_v48  ;;  %v111_v53 = vsel %vm110_vm6, %v262_v33, %v107_v49 }
  0x9a   :  { %v86_v55 = vsub.f32 1.5, %v85_v51  ;;  %v134_v57 = vmul.f32 %v132_v54, %v111_v53 }
  0x9b   :  { %v115_v56 = vmul.f32 0.5, %v114_v52 }
  0x9c   :  { %v243_v59 = vclamps-f32 %v134_v57, 1.0  ;;  %v87_v60 = vmul.f32 %v264_v41, %v86_v55 }
  0x9d   :  { %v116_v58 = vsub.f32 1.5, %v115_v56 }
  0x9e   :  { %v140_v63 = vmul.f32 %v243_v59, %v243_v59  ;;  %v91_v0 = vsel %vm90_vm11, %v264_v41, %v87_v60  ;;  %v181_v8 = vsel %vm180_vm3, %v243_v59, 0.0  ;;  %v168_v25 = vmul.f32 0.87758255, %v243_v59 }
  0x9f   :  { %v117_v62 = vmul.f32 %v266_v46, %v116_v58  ;;  %v133_v3 = vmul.f32 %v131_v61, %v91_v0  ;;  %209 = vst.msk [vmem:[%s423_s3 + $0x8] sm:$0xff] %vm180_vm3, %v91_v0  ;;  %v245_v29 = vadd.f32 -0.23971277, %v243_v59  ;;  %vm174_vm15 = vcmp.gt.f32.partialorder %v243_v59, -0.87758255 }
  0xa0   :  { %v142_v1 = vsub.f32 1.0, %v140_v63  ;;  %v345_v41 = vmov 16.0  }
  0xa1   :  { %v121_v2 = vsel %vm120_vm12, %v266_v46, %v117_v62 }
  0xa2   :  { %267 = vrsqrt.f32 %v142_v1  ;;  %v135_v4 = vmul.f32 %v133_v3, %v121_v2  ;;  %vm151_vm13 = vcmp.eq.f32.partialorder %v142_v1, inf  ;;  %v154_v20 = vand.u32 2147483648, %v142_v1 }
  0xa3   :  { %vm153_vm14 = vcmp.eq.f32.partialorder %v142_v1, 0.0 }
  0xa4   :  { %v244_v5 = vclamps-f32 %v135_v4, 1.0 }
  0xa6   :  { %v141_v6 = vmul.f32 %v244_v5, %v244_v5  ;;  %v182_v9 = vsel %vm180_vm3, %v244_v5, 0.0  ;;  %v169_v36 = vmul.f32 0.87758255, %v244_v5  ;;  %v246_v39 = vadd.f32 -0.23971277, %v244_v5 }
  0xa7   :  { %v183_v12 = vadd.f32 %v182_v9, %v181_v8  ;;  %vm175_vm2 = vcmp.gt.f32.partialorder %v244_v5, -0.87758255 }
  0xa8   :  { %v268_v7 = vpop.eup %267  ;;  %v143_v11 = vsub.f32 1.0, %v141_v6 }
  0xa9   :  { %v145_v10 = vmul.f32 %v268_v7, %v142_v1  ;;  %184 = vadd.xlane.f32.xlu0 %v183_v12 }
  0xaa   :  { %269 = vrsqrt.f32 %v143_v11  ;;  %vm163_vm0 = vcmp.eq.f32.partialorder %v143_v11, inf  ;;  %v166_v33 = vand.u32 2147483648, %v143_v11  ;;  %vm165_vm1 = vcmp.eq.f32.partialorder %v143_v11, 0.0 }
  0xab   :  { %v146_v13 = vmul.f32 %v268_v7, %v145_v10  ;;  %271 = vrcp.f32 %v345_v41 }
  0xad   :  { %v147_v14 = vmul.f32 0.5, %v146_v13 }
  0xaf   :  { %v148_v15 = vsub.f32 1.5, %v147_v14 }
  0xb0   :  { %v270_v16 = vpop.eup %269 }
  0xb1   :  { %v149_v17 = vmul.f32 %v268_v7, %v148_v15  ;;  %v157_v18 = vmul.f32 %v270_v16, %v143_v11  ;;  %v272_v42 = vpop.eup %271 }
  0xb2   :  { %v194_v43 = vmul.f32 16.0, %v272_v42  ;;  %vm198_vm4 = vweird.f32 %v272_v42 }
  0xb3   :  { %v150_v19 = vmul.f32 %v149_v17, %v142_v1  ;;  %v158_v21 = vmul.f32 %v270_v16, %v157_v18 }
  0xb4   :  { %v195_v44 = vsub.f32 1.0, %v194_v43 }
  0xb5   :  { %v152_v22 = vsel %vm151_vm13, %v142_v1, %v150_v19  ;;  %v159_v24 = vmul.f32 0.5, %v158_v21 }
  0xb6   :  { %v155_v23 = vsel %vm153_vm14, %v154_v20, %v152_v22  ;;  %v196_v48 = vmul.f32 %v272_v42, %v195_v44 }
  0xb7   :  { %v170_v26 = vmul.f32 0.47942555, %v155_v23  ;;  %v160_v27 = vsub.f32 1.5, %v159_v24 }
  0xb8   :  { %v197_v51 = vadd.f32 %v272_v42, %v196_v48 }
  0xb9   :  { %v172_v28 = vsub.f32 %v168_v25, %v170_v26  ;;  %v161_v30 = vmul.f32 %v270_v16, %v160_v27 }
  0xba   :  { %v199_v54 = vsel %vm198_vm4, %v272_v42, %v197_v51 }
  0xbb   :  { %v178_v31 = vsel %vm174_vm15, %v172_v28, %v245_v29  ;;  %212 = vst.msk [vmem:[%s425_s5] sm:$0xff] %vm180_vm3, %v172_v28  ;;  %v162_v32 = vmul.f32 %v161_v30, %v143_v11 }
  0xbc   :  { %210 = vst.msk [vmem:[%s424_s4] sm:$0xff] %vm180_vm3, %v178_v31 }
  0xbd   :  { %v164_v34 = vsel %vm163_vm0, %v143_v11, %v162_v32 }
  0xbe   :  { %v167_v35 = vsel %vm165_vm1, %v166_v33, %v164_v34 }
  0xbf   :  { %v171_v37 = vmul.f32 0.47942555, %v167_v35 }
  0xc1   :  { %v173_v38 = vsub.f32 %v169_v36, %v171_v37 }
  0xc3   :  { %v179_v40 = vsel %vm175_vm2, %v173_v38, %v246_v39  ;;  %213 = vst.msk [vmem:[%s425_s5 + $0x8] sm:$0xff] %vm180_vm3, %v173_v38 }
  0xc4   :  { %211 = vst.msk [vmem:[%s424_s4 + $0x8] sm:$0xff] %vm180_vm3, %v179_v40 }
 0x11c   :  { %v185_v45 = vpop.xlane.xlu0 %184 }
 0x11d   :  { %v186_v46 = vrot.slane %v185_v45, 4 }
 0x11f   :  { %v187_v47 = vadd.f32 %v186_v46, %v185_v45 }
 0x121   :  { %v188_v49 = vrot.slane %v187_v47, 2 }
 0x123   :  { %v189_v50 = vadd.f32 %v188_v49, %v187_v47 }
 0x125   :  { %v190_v52 = vrot.slane %v189_v50, 1 }
 0x127   :  { %v191_v53 = vadd.f32 %v190_v52, %v189_v50 }
 0x129   :  { %247 = vpush %v191_v53 }
 0x12a   :  { %249 = vpush %v199_v54 }
 0x15a   :  { %s248_s5 = spop %247 }
 0x15b   :  { %s250_s4 = spop %249 }
 0x15c   :  { %s201_s23 = smul.f32 %s250_s4, %s248_s5 }
 0x15e   :  { %s202_s27 = smul.f32 0.01, %s201_s23 }
 0x160   :  { %s205_s28 = sadd.f32 %s204_s22, %s202_s27 }
 0x162   :  { %207 = sst [smem:[#allocation8]] %s205_s28 }
 0x163   :  { %228 = dma.smem_to_hbm %s346_s29, 16, %s226_s26, [#allocation5]  }
 0x164   :  { %337 = dma.done.wait [#allocation5], 16  }
 0x165   :  { %338 = vsyncadd [#allocation5], 4294967280 }
 0x166   :  { %239 = sfence }
 0x167   :  { %240 = vsyncpa [#allocation4], 1 }
 0x168   :  { %241 = vsyncpa [#allocation7], 1 }
 0x169   :  { %242 = vsyncpa [#allocation5], 1 }

</bundles_post_ra>
